<compile_context>
chip_gen: v5e
topology: v5e:2x2
jax: 0.10.0
libtpu: 0.0.40
codegen_flags: <defaults>
</compile_context>

<pallas_src>
import functools

import jax
import jax.numpy as jnp
from jax.experimental import pallas as pl
from jax.experimental.pallas import tpu as pltpu

LANE = 128
CHUNK_ROWS = 1024            # rows per fused in-kernel chunk (~512 KiB f32 temporaries)
ACC_ROWS = 64                # accumulator rows -> 8 independent vreg add chains
TILE_ROWS_CAP = 8192         # 4 MiB f32 per input block; 2 in x 2 buf = 16 MiB VMEM
VMEM_LIMIT_BYTES = 32 * 1024 * 1024


def _round_down(x, m):
    return (x // m) * m


def rmsle_kernel(p_ref, a_ref, o_ref, *, blocks_per_core, tile_rows, chunk_rows,
                 acc_rows, valid_rows, masked):
    c = pl.program_id(0)          # TensorCore / parallel axis
    i = pl.program_id(1)          # reduction (row-block) axis
    block_start = (c * blocks_per_core + i) * tile_rows

    @pl.when(i == 0)
    def _():
        o_ref[...] = jnp.zeros_like(o_ref)

    def chunk_sum(r0):
        p = p_ref[pl.ds(r0, chunk_rows), :].astype(jnp.float32)
        a = a_ref[pl.ds(r0, chunk_rows), :].astype(jnp.float32)
        # One log per element; padded zeros contribute log(1/1) = 0.
        d = jnp.log((p + 1.0) / (a + 1.0))
        sq = d * d
        if masked:
            # Mask overhanging / stale rows of the (possibly partial) last
            # block.  Select-based masking: NaN/Inf from stale data cannot leak.
            row = block_start + r0 + jax.lax.broadcasted_iota(
                jnp.int32, (chunk_rows, LANE), 0)
            sq = jnp.where(row < valid_rows, sq, 0.0)
        # Row-strided reduce onto acc_rows rows: pure VPU adds, multiple
        # independent chains, no cross-lane work in steady state.
        return jnp.sum(sq.reshape(-1, acc_rows, LANE), axis=0)

    n_chunks = tile_rows // chunk_rows
    if n_chunks == 1:
        partial = chunk_sum(0)
    else:
        def body(ci, acc):
            r0 = pl.multiple_of(ci * chunk_rows, chunk_rows)
            return acc + chunk_sum(r0)

        partial = jax.lax.fori_loop(
            0, n_chunks, body, jnp.zeros((acc_rows, LANE), jnp.float32))

    # Output block is VMEM-resident across the "arbitrary" axis: it IS the
    # per-core accumulator; combined / sqrt'ed in the wrapper.
    o_ref[...] += partial[None]


def rmsle_loss(pred, actual, *, tile_rows_cap=TILE_ROWS_CAP):
    assert pred.shape == actual.shape, "pred/actual must have the same shape"
    total = pred.size
    assert total > 0

    # Sublane granularity of the narrower input dtype (f32->8, bf16->16, i8->32).
    min_itemsize = max(1, min(pred.dtype.itemsize, actual.dtype.itemsize))
    row_gran = 8 * max(1, 4 // min_itemsize)

    p_flat = pred.reshape(-1)
    a_flat = actual.reshape(-1)
    # Pad ONLY when total isn't a multiple of 128, and only to the next 128
    # multiple (zeros contribute 0 to the sum; the mean uses the true count).
    rows = pl.cdiv(total, LANE)
    pad = rows * LANE - total
    if pad:
        p_flat = jnp.pad(p_flat, (0, pad))
        a_flat = jnp.pad(a_flat, (0, pad))
    p2 = p_flat.reshape(rows, LANE)
    a2 = a_flat.reshape(rows, LANE)

    # Tile-size selection.  Block rows must be a multiple of the sublane
    # granularity, or equal the full row count (tiny-input case).
    if rows >= CHUNK_ROWS:
        tile_rows = min(tile_rows_cap, _round_down(rows, CHUNK_ROWS))
        chunk_rows = CHUNK_ROWS
    elif rows >= row_gran:
        tile_rows = _round_down(rows, row_gran)
        chunk_rows = tile_rows
    else:
        tile_rows = rows
        chunk_rows = rows

    if chunk_rows % ACC_ROWS == 0:
        acc_rows = ACC_ROWS
    elif chunk_rows % 8 == 0:
        acc_rows = 8
    else:
        acc_rows = chunk_rows

    n_blocks = pl.cdiv(rows, tile_rows)
    # Leading "parallel" axis -> sharded across the 2 TensorCores on v7x;
    # a plain serial loop (near-free) on v5e/v6e.  Skip it for single-block inputs.
    num_cores = 2 if n_blocks >= 2 else 1
    bpc = pl.cdiv(n_blocks, num_cores)
    coverage = num_cores * bpc * tile_rows
    masked = coverage != rows

    def in_index(c, i):
        # Clamp so overhang grid steps (odd n_blocks) stay in bounds; their
        # contribution is fully masked in-kernel via the row test.
        return (jnp.minimum(c * bpc + i, n_blocks - 1), 0)

    kernel = functools.partial(
        rmsle_kernel,
        blocks_per_core=bpc, tile_rows=tile_rows, chunk_rows=chunk_rows,
        acc_rows=acc_rows, valid_rows=rows, masked=masked)

    cost = pl.CostEstimate(
        flops=6 * total,
        transcendentals=2 * total,          # log + reciprocal (from the divide)
        bytes_accessed=total * (pred.dtype.itemsize + actual.dtype.itemsize),
    )

    partials = pl.pallas_call(
        kernel,
        out_shape=jax.ShapeDtypeStruct((num_cores, acc_rows, LANE), jnp.float32),
        grid_spec=pltpu.PrefetchScalarGridSpec(
            num_scalar_prefetch=0,
            grid=(num_cores, bpc),
            in_specs=[
                pl.BlockSpec((tile_rows, LANE), in_index),
                pl.BlockSpec((tile_rows, LANE), in_index),
            ],
            out_specs=pl.BlockSpec((1, acc_rows, LANE), lambda c, i: (c, 0, 0)),
        ),
        compiler_params=pltpu.CompilerParams(
            dimension_semantics=("parallel", "arbitrary"),
            vmem_limit_bytes=VMEM_LIMIT_BYTES,
        ),
        cost_estimate=cost,
    )(p2, a2)

    # Combine per-core partial sums; divide by the TRUE element count.
    # (total is carried as f32 -> exact up to ~2^24 elements; fine here.)
    return jnp.sqrt(jnp.sum(partials) / jnp.float32(total))


def _ref_rmsle(pred, actual):
    return jnp.sqrt(jnp.mean((jnp.log(pred + 1.0) - jnp.log(actual + 1.0)) ** 2))


if __name__ == "__main__":
    key = jax.random.PRNGKey(0)

    # Primary small NCHW-shaped example consistent with a regression loss.
    kp, ka, key = jax.random.split(key, 3)
    shape = (2, 4, 16, 16)
    pred = jax.random.uniform(kp, shape, dtype=jnp.float32)     # non-negative
    actual = jax.random.uniform(ka, shape, dtype=jnp.float32)   # non-negative
    loss = rmsle_loss(pred, actual)
    jax.block_until_ready(loss)
    ref = _ref_rmsle(pred, actual)
    assert jnp.allclose(loss, ref, rtol=1e-5, atol=1e-6), (loss, ref)

    # Non-128-multiple size: exercises lane padding, the 2-core grid split and
    # the in-kernel overhang masking.
    kp, ka, key = jax.random.split(key, 3)
    shape2 = (3, 5, 7, 11)
    pred2 = jax.random.uniform(kp, shape2, dtype=jnp.float32)
    actual2 = jax.random.uniform(ka, shape2, dtype=jnp.float32)
    loss2 = rmsle_loss(pred2, actual2)
    jax.block_until_ready(loss2)
    ref2 = _ref_rmsle(pred2, actual2)
    assert jnp.allclose(loss2, ref2, rtol=1e-5, atol=1e-6), (loss2, ref2)

    # Larger (still quick) size: exercises the chunked fori_loop + wide
    # (64, 128) accumulator path.
    kp, ka, key = jax.random.split(key, 3)
    shape3 = (2, 4, 128, 256)
    pred3 = jax.random.uniform(kp, shape3, dtype=jnp.float32)
    actual3 = jax.random.uniform(ka, shape3, dtype=jnp.float32)
    loss3 = rmsle_loss(pred3, actual3)
    jax.block_until_ready(loss3)
    ref3 = _ref_rmsle(pred3, actual3)
    assert jnp.allclose(loss3, ref3, rtol=1e-5, atol=1e-6), (loss3, ref3)

    print("KERNEL_OK")
</pallas_src>

<mosaic_0001>
module attributes {stable_mosaic.version = 11 : i64} {
  func.func @rmsle_kernel(%arg0: i32, %arg1: i32, %arg2: memref<16x128xf32, #tpu.memory_space<vmem>>, %arg3: memref<16x128xf32, #tpu.memory_space<vmem>>, %arg4: memref<1x8x128xf32, #tpu.memory_space<vmem>>) attributes {dimension_semantics = [#tpu.dimension_semantics<parallel>, #tpu.dimension_semantics<arbitrary>], iteration_bounds = array<i64: 1, 1>, scalar_prefetch = 0 : i64, scratch_operands = 0 : i64, tpu.core_type = #tpu.core_type<tc>, window_params = [{transform_indices = @transform_0, window_bounds = array<i64: 16, 128>}, {transform_indices = @transform_1, window_bounds = array<i64: 16, 128>}, {transform_indices = @transform_2, window_bounds = array<i64: 1, 8, 128>}]} {
    %c0_i32 = arith.constant 0 : i32
    %0 = arith.cmpi eq, %arg1, %c0_i32 : i32
    %1 = arith.extui %0 : i1 to i32
    %c0_i32_0 = arith.constant 0 : i32
    %2 = arith.cmpi ne, %1, %c0_i32_0 : i32
    scf.if %2 {
      %cst_12 = arith.constant 0.000000e+00 : f32
      %18 = vector.broadcast %cst_12 : f32 to vector<1x8x128xf32>
      %c0_13 = arith.constant 0 : index
      %c0_14 = arith.constant 0 : index
      %c0_15 = arith.constant 0 : index
      %19 = vector.load %arg4[%c0_13, %c0_14, %c0_15] : memref<1x8x128xf32, #tpu.memory_space<vmem>>, vector<1x8x128xf32>
      tpu.vector_store %arg4[%c0_13, %c0_14, %c0_15], %18 {strides = array<i32>} : memref<1x8x128xf32, #tpu.memory_space<vmem>>, vector<1x8x128xf32>,
    } else {
    }
    %c0 = arith.constant 0 : index
    %c0_1 = arith.constant 0 : index
    %3 = vector.load %arg2[%c0, %c0_1] : memref<16x128xf32, #tpu.memory_space<vmem>>, vector<16x128xf32>
    %c0_2 = arith.constant 0 : index
    %c0_3 = arith.constant 0 : index
    %4 = vector.load %arg3[%c0_2, %c0_3] : memref<16x128xf32, #tpu.memory_space<vmem>>, vector<16x128xf32>
    %cst = arith.constant 1.000000e+00 : f32
    %5 = vector.broadcast %cst : f32 to vector<16x128xf32>
    %6 = arith.addf %3, %5 : vector<16x128xf32>
    %cst_4 = arith.constant 1.000000e+00 : f32
    %7 = vector.broadcast %cst_4 : f32 to vector<16x128xf32>
    %8 = arith.addf %4, %7 : vector<16x128xf32>
    %9 = arith.divf %6, %8 : vector<16x128xf32>
    %10 = math.log %9 : vector<16x128xf32>
    %11 = arith.mulf %10, %10 : vector<16x128xf32>
    %12 = vector.shape_cast %11 : vector<16x128xf32> to vector<2x8x128xf32>
    %cst_5 = arith.constant dense<0.000000e+00> : vector<8x128xf32>
    %13 = vector.multi_reduction <add>, %12, %cst_5 [0] : vector<2x8x128xf32> to vector<8x128xf32>
    %c0_6 = arith.constant 0 : index
    %c0_7 = arith.constant 0 : index
    %c0_8 = arith.constant 0 : index
    %14 = vector.load %arg4[%c0_6, %c0_7, %c0_8] : memref<1x8x128xf32, #tpu.memory_space<vmem>>, vector<1x8x128xf32>
    %15 = vector.shape_cast %13 : vector<8x128xf32> to vector<1x8x128xf32>
    %16 = arith.addf %14, %15 : vector<1x8x128xf32>
    %c0_9 = arith.constant 0 : index
    %c0_10 = arith.constant 0 : index
    %c0_11 = arith.constant 0 : index
    %17 = vector.load %arg4[%c0_9, %c0_10, %c0_11] : memref<1x8x128xf32, #tpu.memory_space<vmem>>, vector<1x8x128xf32>
    tpu.vector_store %arg4[%c0_9, %c0_10, %c0_11], %16 {strides = array<i32>} : memref<1x8x128xf32, #tpu.memory_space<vmem>>, vector<1x8x128xf32>,
    return
  }
  func.func @transform_0(%arg0: i32, %arg1: i32) -> (i32, i32) {
    %c1_i32 = arith.constant 1 : i32
    %0 = arith.muli %arg0, %c1_i32 : i32
    %1 = arith.addi %0, %arg1 : i32
    %c0_i32 = arith.constant 0 : i32
    %2 = arith.minsi %1, %c0_i32 : i32
    %c0_i32_0 = arith.constant 0 : i32
    %c0_i32_1 = arith.constant 0 : i32
    return %2, %c0_i32_0 : i32, i32
  }
  func.func @transform_1(%arg0: i32, %arg1: i32) -> (i32, i32) {
    %c1_i32 = arith.constant 1 : i32
    %0 = arith.muli %arg0, %c1_i32 : i32
    %1 = arith.addi %0, %arg1 : i32
    %c0_i32 = arith.constant 0 : i32
    %2 = arith.minsi %1, %c0_i32 : i32
    %c0_i32_0 = arith.constant 0 : i32
    %c0_i32_1 = arith.constant 0 : i32
    return %2, %c0_i32_0 : i32, i32
  }
  func.func @transform_2(%arg0: i32, %arg1: i32) -> (i32, i32, i32) {
    %c0_i32 = arith.constant 0 : i32
    %c0_i32_0 = arith.constant 0 : i32
    %c0_i32_1 = arith.constant 0 : i32
    return %arg0, %c0_i32, %c0_i32_0 : i32, i32, i32
  }
}

</mosaic_0001>

<bundles_post_ra>
// kernel: tpu_custom_call.1
= control target key start
LH: loop header
LB: loop body
LE: loop exit
PB: predicated region body
PF: predicated region fallthrough
CT: control target
= control target key end

     0   :  { %7 = vsyncpa [#allocation3], 0  ;;  %s260_s0 = inlined_call_operand.hbm [shape: f32[16,128], index: 0, kind: input, shape index: {}]   ;;  %s261_s1 = inlined_call_operand.hbm [shape: f32[16,128], index: 1, kind: input, shape index: {}]   ;;  %s262_s2 = inlined_call_operand.hbm [shape: f32[1,8,128], index: 2, kind: output, shape index: {}]  }
   0x1   :  { %8 = vsyncpa [#allocation6], 0 }
   0x2   :  { %9 = vsyncpa [#allocation4], 0  ;;  %s20_s11 = sshll.u32 %s260_s0, 4  ;;  %s231_s12 = smov [#allocation2]   ;;  %s21_s11 = int_to_ptr.hbm [resolvable:$true] %s20_s11 }
   0x3   :  { %s22_s13 = sshll.u32 %s231_s12, 4  ;;  %s39_s16 = sshll.u32 %s261_s1, 4  ;;  %s23_s13 = int_to_ptr.vmem [resolvable:$true] %s22_s13  ;;  %s40_s16 = int_to_ptr.hbm [resolvable:$true] %s39_s16 }
   0x4   :  { %s232_s17 = smov 128   ;;  %s233_s18 = smov 8  }
   0x5   :  { %28 = dma.hbm_to_vmem [thread:$0]  %s21_s11, 256, %s23_s13, [#allocation3], %s232_s17, %s232_s17, %s233_s18  }
   0x6   :  { %s234_s19 = smov [#allocation5]  }
   0x7   :  { %s41_s20 = sshll.u32 %s234_s19, 4  ;;  %s42_s20 = int_to_ptr.vmem [resolvable:$true] %s41_s20 }
   0x8   :  { %47 = dma.hbm_to_vmem [thread:$0]  %s40_s16, 256, %s42_s20, [#allocation6], %s232_s17, %s232_s17, %s233_s18  }
   0x9   :  { %225 = dma.done.wait [#allocation3], 256  }
   0xa   :  { %226 = vsyncadd [#allocation3], 4294967040 }
   0xb   :  { %227 = dma.done.wait [#allocation6], 256  }
   0xc   :  { %228 = vsyncadd [#allocation6], 4294967040  ;;  %v71_v0 = vld [vmem:[#allocation5] sm:$0xff]  ;;  %v72_v1 = vld [vmem:[#allocation5 + $0x8] sm:$0xff]  ;;  %s235_s0 = smov [#allocation7]   ;;  %s124_s23 = sshll.u32 %s262_s2, 4  ;;  %s125_s23 = int_to_ptr.hbm [resolvable:$true] %s124_s23 }
   0xd   :  { %v75_v2 = vadd.f32 1.0, %v71_v0  ;;  %v76_v3 = vadd.f32 1.0, %v72_v1  ;;  %v69_v12 = vld [vmem:[#allocation2] sm:$0xff]  ;;  %v70_v15 = vld [vmem:[#allocation2 + $0x8] sm:$0xff]  ;;  %s122_s1 = sshll.u32 %s235_s0, 4  ;;  %s123_s1 = int_to_ptr.vmem [resolvable:$true] %s122_s1 }
   0xe   :  { %v73_v19 = vadd.f32 1.0, %v69_v12  ;;  %v74_v22 = vadd.f32 1.0, %v70_v15 }
   0xf   :  { %145 = vrcp.f32 %v75_v2  ;;  %vm82_vm0 = vweird.f32 %v75_v2  ;;  %v88_v7 = vand.u32 2147483648, %v75_v2  ;;  %v86_v10 = vand.u32 2147483647, %v75_v2 }
  0x10   :  { %147 = vrcp.f32 %v76_v3  ;;  %v103_v11 = vand.u32 2147483648, %v76_v3  ;;  %vm97_vm2 = vweird.f32 %v76_v3  ;;  %v101_v14 = vand.u32 2147483647, %v76_v3 }
  0x11   :  { %v89_v17 = vor.u32 1.1754944e-38, %v88_v7  ;;  %vm87_vm5 = vcmp.eq.f32.partialorder %v86_v10, 8.507059e+37 }
  0x12   :  { %v104_v21 = vor.u32 1.1754944e-38, %v103_v11  ;;  %vm102_vm7 = vcmp.eq.f32.partialorder %v101_v14, 8.507059e+37 }
  0x15   :  { %v146_v4 = vpop.eup %145 }
  0x16   :  { %v148_v5 = vpop.eup %147  ;;  %v78_v6 = vmul.f32 %v146_v4, %v75_v2  ;;  %vm83_vm1 = vweird.f32 %v146_v4 }
  0x17   :  { %v93_v8 = vmul.f32 %v148_v5, %v76_v3  ;;  %vm98_vm3 = vweird.f32 %v148_v5  ;;  %vm84_vm4 = vmor %vm82_vm0, %vm83_vm1 }
  0x18   :  { %v79_v9 = vsub.f32 1.0, %v78_v6  ;;  %vm99_vm6 = vmor %vm97_vm2, %vm98_vm3 }
  0x19   :  { %v94_v13 = vsub.f32 1.0, %v93_v8 }
  0x1a   :  { %v80_v16 = vmul.f32 %v146_v4, %v79_v9 }
  0x1b   :  { %v95_v18 = vmul.f32 %v148_v5, %v94_v13 }
  0x1c   :  { %v81_v20 = vadd.f32 %v146_v4, %v80_v16 }
  0x1d   :  { %v96_v23 = vadd.f32 %v148_v5, %v95_v18 }
  0x1e   :  { %v85_v24 = vsel %vm84_vm4, %v146_v4, %v81_v20 }
  0x1f   :  { %v90_v25 = vsel %vm87_vm5, %v89_v17, %v85_v24  ;;  %v100_v26 = vsel %vm99_vm6, %v148_v5, %v96_v23 }
  0x20   :  { %v91_v27 = vmul.f32 %v90_v25, %v73_v19  ;;  %v105_v28 = vsel %vm102_vm7, %v104_v21, %v100_v26 }
  0x21   :  { %v106_v29 = vmul.f32 %v105_v28, %v74_v22 }
  0x22   :  { %149 = vlog2.f32 %v91_v27 }
  0x23   :  { %151 = vlog2.f32 %v106_v29 }
  0x28   :  { %v150_v30 = vpop.eup %149 }
  0x29   :  { %v152_v31 = vpop.eup %151  ;;  %v108_v32 = vmul.f32 0.6931472, %v150_v30 }
  0x2a   :  { %v110_v33 = vmul.f32 0.6931472, %v152_v31 }
  0x2b   :  { %v111_v34 = vmul.f32 %v108_v32, %v108_v32 }
  0x2c   :  { %v112_v35 = vmul.f32 %v110_v33, %v110_v33 }
  0x2e   :  { %v113_v36 = vadd.f32 %v112_v35, %v111_v34 }
  0x30   :  { %116 = vst [vmem:[#allocation7] sm:$0xff] %v113_v36 }
  0x31   :  { %127 = dma.vmem_to_hbm [thread:$0]  %s123_s1, 128, %s125_s23, [#allocation4]  }
  0x32   :  { %229 = dma.done.wait [#allocation4], 128  }
  0x33   :  { %230 = vsyncadd [#allocation4], 4294967168 }
  0x34   :  { %132 = vsyncpa [#allocation3], 1 }
  0x35   :  { %133 = vsyncpa [#allocation6], 1 }
  0x36   :  { %134 = vsyncpa [#allocation4], 1 }

</bundles_post_ra>
